<compile_context>
chip_gen: v7x
topology: tpu7x:2x2x1
jax: 0.10.0
libtpu: 0.0.40
codegen_flags: <defaults>
</compile_context>

<pallas_src>
import functools

import jax
import jax.numpy as jnp
from jax.experimental import pallas as pl
from jax.experimental.pallas import tpu as pltpu


def ca_net_kernel(emb_ref, w_ref, b_ref, eps_ref,
                  c_ref, mu_ref, logvar_ref, *, c_dim):
    # fc: MXU matmul (bf16 operands, f32 accumulation).
    x = jnp.dot(emb_ref[...], w_ref[...], preferred_element_type=jnp.float32)

    # Epilogue stays in float32 (bias add, ReLU) — keep it off bf16 for v5e.
    x = jnp.maximum(x + b_ref[...], 0.0)            # [B, 2C] f32

    # 128-lane aligned split (c_dim is a multiple of 128) — no sub-vreg shuffles.
    mu = x[:, :c_dim]
    logvar = x[:, c_dim:]

    # Reparametrization: c = eps * exp(0.5 * logvar) + mu, all f32.
    std = jnp.exp(0.5 * logvar)
    c_code = eps_ref[...] * std + mu

    # Three lane-dense 128-wide outputs: full unmasked vector stores.
    c_ref[...] = c_code
    mu_ref[...] = mu
    logvar_ref[...] = logvar


def ca_net_forward(text_embedding, w, b, eps, *, c_dim):
    """text_embedding: [B, T] f32; w: [T, 2C] (bf16 preferred); b: [1, 2C] f32;
    eps: [B, C] f32 ~ N(0,1). Returns (c_code, mu, logvar), each [B, C] f32."""
    B, t_dim = text_embedding.shape
    assert w.shape == (t_dim, 2 * c_dim)
    assert b.shape == (1, 2 * c_dim)
    assert eps.shape == (B, c_dim)
    assert c_dim % 128 == 0, "keep the mu/logvar split 128-lane aligned"
    assert B % 8 == 0, "keep the sublane dimension 8-aligned"

    # MXU operands in the same (narrow) dtype; epilogue remains f32.
    emb_mxu = text_embedding.astype(w.dtype)

    cost = pl.CostEstimate(
        flops=2 * B * t_dim * 2 * c_dim,
        transcendentals=B * c_dim,  # exp(0.5 * logvar)
        bytes_accessed=(emb_mxu.size * emb_mxu.dtype.itemsize
                        + w.size * w.dtype.itemsize
                        + b.size * b.dtype.itemsize
                        + eps.size * eps.dtype.itemsize
                        + 3 * B * c_dim * 4),
    )

    # Single grid step; every operand is one full block resident in VMEM.
    full = lambda shape: pl.BlockSpec(shape, lambda: tuple(0 for _ in shape))

    c_code, mu, logvar = pl.pallas_call(
        functools.partial(ca_net_kernel, c_dim=c_dim),
        out_shape=(
            jax.ShapeDtypeStruct((B, c_dim), jnp.float32),
            jax.ShapeDtypeStruct((B, c_dim), jnp.float32),
            jax.ShapeDtypeStruct((B, c_dim), jnp.float32),
        ),
        grid=(),
        in_specs=[
            full(emb_mxu.shape),
            full(w.shape),
            full(b.shape),
            full(eps.shape),
        ],
        out_specs=(
            full((B, c_dim)),
            full((B, c_dim)),
            full((B, c_dim)),
        ),
        cost_estimate=cost,
    )(emb_mxu, w, b, eps)

    return c_code, mu, logvar


if __name__ == "__main__":
    # Real StackGAN condition dim (cfg.GAN.CONDITION_DIM = 128) so the split is
    # tile aligned; modest text dim / batch keeps the example small.
    B, T_DIM, C_DIM = 8, 256, 128

    key = jax.random.PRNGKey(0)
    k_emb, k_w, k_b, k_eps = jax.random.split(key, 4)

    text_embedding = jax.random.normal(k_emb, (B, T_DIM), dtype=jnp.float32)

    # PyTorch nn.Linear default init: U(-1/sqrt(fan_in), 1/sqrt(fan_in)),
    # with W pre-transposed to [T_DIM, 2*C_DIM] for row-major matmul.
    # W is cast to bf16 ONCE here (outside any training loop) — halves the
    # dominant weight DMA while the MXU still accumulates in f32.
    bound = 1.0 / (T_DIM ** 0.5)
    w_f32 = jax.random.uniform(k_w, (T_DIM, 2 * C_DIM), jnp.float32, -bound, bound)
    w = w_f32.astype(jnp.bfloat16)
    b = jax.random.uniform(k_b, (1, 2 * C_DIM), jnp.float32, -bound, bound)

    # Reparameterization noise: fresh per call from the caller's PRNG key
    # (vary the key per step / per replica in training).
    eps = jax.random.normal(k_eps, (B, C_DIM), dtype=jnp.float32)

    c_code, mu, logvar = ca_net_forward(text_embedding, w, b, eps, c_dim=C_DIM)
    jax.block_until_ready((c_code, mu, logvar))

    # Reference with the SAME bf16-cast MXU operands (f32 accumulation), so the
    # check is about the kernel, not about the precision of the weight cast.
    emb_m = text_embedding.astype(jnp.bfloat16).astype(jnp.float32)
    w_m = w.astype(jnp.float32)
    x_ref = jnp.maximum(emb_m @ w_m + b, 0.0)
    mu_ref, logvar_ref = x_ref[:, :C_DIM], x_ref[:, C_DIM:]
    c_ref = eps * jnp.exp(0.5 * logvar_ref) + mu_ref

    assert jnp.allclose(mu, mu_ref, rtol=1e-2, atol=1e-2)
    assert jnp.allclose(logvar, logvar_ref, rtol=1e-2, atol=1e-2)
    assert jnp.allclose(c_code, c_ref, rtol=1e-2, atol=1e-2)
    assert bool(jnp.all(jnp.isfinite(c_code)))

    print("KERNEL_OK")
</pallas_src>

<mosaic_0001>
module attributes {stable_mosaic.version = 11 : i64} {
  func.func @ca_net_kernel(%arg0: memref<8x256xbf16, #tpu.memory_space<vmem>>, %arg1: memref<256x256xbf16, #tpu.memory_space<vmem>>, %arg2: memref<1x256xf32, #tpu.memory_space<vmem>>, %arg3: memref<8x128xf32, #tpu.memory_space<vmem>>, %arg4: memref<8x128xf32, #tpu.memory_space<vmem>>, %arg5: memref<8x128xf32, #tpu.memory_space<vmem>>, %arg6: memref<8x128xf32, #tpu.memory_space<vmem>>) attributes {dimension_semantics = [], scalar_prefetch = 0 : i64, scratch_operands = 0 : i64, tpu.core_type = #tpu.core_type<tc>} {
    %c0 = arith.constant 0 : index
    %c0_0 = arith.constant 0 : index
    %0 = vector.load %arg0[%c0, %c0_0] : memref<8x256xbf16, #tpu.memory_space<vmem>>, vector<8x256xbf16>
    %c0_1 = arith.constant 0 : index
    %c0_2 = arith.constant 0 : index
    %1 = vector.load %arg1[%c0_1, %c0_2] : memref<256x256xbf16, #tpu.memory_space<vmem>>, vector<256x256xbf16>
    %cst = arith.constant dense<0.000000e+00> : vector<8x256xf32>
    %2 = tpu.matmul %0, %1, %cst {dimension_numbers = #tpu.dot_dimension_numbers<[1], [0], [0], [1], [0, 0, 1, 1], [], []>} : vector<8x256xbf16>, vector<256x256xbf16>, vector<8x256xf32> -> vector<8x256xf32>
    %c0_3 = arith.constant 0 : index
    %c0_4 = arith.constant 0 : index
    %3 = vector.load %arg2[%c0_3, %c0_4] : memref<1x256xf32, #tpu.memory_space<vmem>>, vector<1x256xf32>
    %4 = vector.broadcast %3 : vector<1x256xf32> to vector<8x256xf32>
    %5 = arith.addf %2, %4 : vector<8x256xf32>
    %cst_5 = arith.constant 0.000000e+00 : f32
    %6 = vector.broadcast %cst_5 : f32 to vector<8x256xf32>
    %7 = arith.maximumf %5, %6 : vector<8x256xf32>
    %8 = vector.extract_strided_slice %7 {offsets = [0, 0], sizes = [8, 128], strides = [1, 1]} : vector<8x256xf32> to vector<8x128xf32>
    %9 = vector.extract_strided_slice %7 {offsets = [0, 128], sizes = [8, 128], strides = [1, 1]} : vector<8x256xf32> to vector<8x128xf32>
    %cst_6 = arith.constant 5.000000e-01 : f32
    %10 = vector.broadcast %cst_6 : f32 to vector<8x128xf32>
    %11 = arith.mulf %10, %9 : vector<8x128xf32>
    %12 = math.exp %11 : vector<8x128xf32>
    %c0_7 = arith.constant 0 : index
    %c0_8 = arith.constant 0 : index
    %13 = vector.load %arg3[%c0_7, %c0_8] : memref<8x128xf32, #tpu.memory_space<vmem>>, vector<8x128xf32>
    %14 = arith.mulf %13, %12 : vector<8x128xf32>
    %15 = arith.addf %14, %8 : vector<8x128xf32>
    %c0_9 = arith.constant 0 : index
    %c0_10 = arith.constant 0 : index
    %16 = vector.load %arg4[%c0_9, %c0_10] : memref<8x128xf32, #tpu.memory_space<vmem>>, vector<8x128xf32>
    tpu.vector_store %arg4[%c0_9, %c0_10], %15 {strides = array<i32>} : memref<8x128xf32, #tpu.memory_space<vmem>>, vector<8x128xf32>,
    %c0_11 = arith.constant 0 : index
    %c0_12 = arith.constant 0 : index
    %17 = vector.load %arg5[%c0_11, %c0_12] : memref<8x128xf32, #tpu.memory_space<vmem>>, vector<8x128xf32>
    tpu.vector_store %arg5[%c0_11, %c0_12], %8 {strides = array<i32>} : memref<8x128xf32, #tpu.memory_space<vmem>>, vector<8x128xf32>,
    %c0_13 = arith.constant 0 : index
    %c0_14 = arith.constant 0 : index
    %18 = vector.load %arg6[%c0_13, %c0_14] : memref<8x128xf32, #tpu.memory_space<vmem>>, vector<8x128xf32>
    tpu.vector_store %arg6[%c0_13, %c0_14], %9 {strides = array<i32>} : memref<8x128xf32, #tpu.memory_space<vmem>>, vector<8x128xf32>,
    return
  }
}

</mosaic_0001>

<bundles_post_ra>
// kernel: tpu_custom_call.1
= control target key start
LH: loop header
LB: loop body
LE: loop exit
PB: predicated region body
PF: predicated region fallthrough
CT: control target
= control target key end

     0   :  { %12 = vsyncpa [#allocation3], 0  ;;  %s688_s0 = inlined_call_operand.hbm [shape: bf16[8,256], index: 0, kind: input, shape index: {}]   ;;  %s689_s1 = inlined_call_operand.hbm [shape: bf16[256,256], index: 1, kind: input, shape index: {}]   ;;  %s690_s2 = inlined_call_operand.vmem [shape: f32[1,256], index: 2, kind: input, shape index: {}]   ;;  %s691_s3 = inlined_call_operand.vmem [shape: f32[8,128], index: 3, kind: input, shape index: {}]   ;;  %s692_s4 = inlined_call_operand.hbm [shape: f32[8,128], index: 4, kind: output, shape index: {0}]   ;;  %s693_s5 = inlined_call_operand.hbm [shape: f32[8,128], index: 5, kind: output, shape index: {1}]   ;;  %s694_s6 = inlined_call_operand.hbm [shape: f32[8,128], index: 6, kind: output, shape index: {2}]  }
   0x1   :  { %13 = vsyncpa [#allocation6], 0 }
   0x2   :  { %14 = vsyncpa [#allocation4], 0 }
   0x3   :  { %15 = vsyncpa [#allocation9], 0  ;;  %s566_s21 = smov [#allocation2]   ;;  %s567_s23 = smov [#allocation5]  }
   0x4   :  { %s22_s22 = sshll.u32 %s566_s21, 4  ;;  %s31_s24 = sshll.u32 %s567_s23, 4  ;;  %s23_s22 = int_to_ptr.vmem [resolvable:$true] %s22_s22  ;;  %s608_s24 = int_to_ptr.vmem [resolvable:$true] %s31_s24 }
   0x5   :  { %s448_s27 = scalar_lea.hbm %s688_s0, 128 }
   0x6   :  { %p449_p0 = scmp.ne.s32.totalorder %s688_s0, %s448_s27  ;;  %p452_p1 = scmp.lt.u32.totalorder %s448_s27, %s688_s0 }
   0x8   :  { %p454_p2 = pnand %p452_p1, %p449_p0 }
   0xa   :  { %457 = shalt.err (!%p454_p2)
}
   0xb   :  { %s458_s8 = scalar_lea.vmem %s23_s22, 128  ;;  %p463_p4 = scmp.lt.s32.totalorder %s23_s22, %s23_s22 }
   0xc   :  { %p459_p3 = scmp.ne.s32.totalorder %s23_s22, %s458_s8  ;;  %p464_p5 = scmp.lt.s32.totalorder %s458_s8, %s458_s8 }
   0xe   :  { %p465_p6 = por %p464_p5, %p463_p4 }
  0x10   :  { %p466_p7 = pnand %p465_p6, %p459_p3 }
  0x12   :  { %469 = shalt.err (!%p466_p7)
}
  0x13   :  { %25 = dma.hbm_to_vmem [thread:$0]  %s688_s0, 128, %s23_s22, [#allocation3]  }
  0x14   :  { %s470_s13 = scalar_lea.hbm %s689_s1, 4096 }
  0x15   :  { %p471_p8 = scmp.ne.s32.totalorder %s689_s1, %s470_s13  ;;  %p474_p9 = scmp.lt.u32.totalorder %s470_s13, %s689_s1 }
  0x17   :  { %p476_p10 = pnand %p474_p9, %p471_p8 }
  0x19   :  { %479 = shalt.err (!%p476_p10)
}
  0x1a   :  { %s480_s18 = scalar_lea.vmem %s608_s24, 4096  ;;  %p485_p12 = scmp.lt.s32.totalorder %s608_s24, %s608_s24 }
  0x1b   :  { %p481_p11 = scmp.ne.s32.totalorder %s608_s24, %s480_s18  ;;  %p486_p13 = scmp.lt.s32.totalorder %s480_s18, %s480_s18 }
  0x1d   :  { %p487_p0 = por %p486_p13, %p485_p12 }
  0x1f   :  { %p488_p1 = pnand %p487_p0, %p481_p11 }
  0x21   :  { %491 = shalt.err (!%p488_p1)
}
  0x22   :  { %s568_s0 = smov 128   ;;  %s569_s19 = smov 8  }
  0x23   :  { %37 = dma.hbm_to_vmem [thread:$0]  %s689_s1, 4096, %s608_s24, [#allocation6], %s568_s0, %s568_s0, %s569_s19  }
  0x24   :  { %558 = dma.done.wait [#allocation3], 128  }
  0x25   :  { %559 = vsyncadd [#allocation3], 4294967168 }
  0x26   :  { %560 = dma.done.wait [#allocation6], 4096  }
  0x27   :  { %561 = vsyncadd [#allocation6], 4294963200  ;;  %v396_v0 = vld [vmem:[#allocation5 + $0x4] ss:$8 sps:$4 sm:$0xff]   ;;  %v398_v1 = vld [vmem:[#allocation5] ss:$8 sps:$4 sm:$0xff]   ;;  %v83_v35 = vlaneseq }
  0x28   :  { %260 = vmatprep.subr.bf16.mxu0 %v396_v0  ;;  %v399_v2 = vld [vmem:[#allocation5 + $0x14] ss:$8 sps:$4 sm:$0xff]   ;;  %v401_v3 = vld [vmem:[#allocation5 + $0x10] ss:$8 sps:$4 sm:$0xff]   ;;  %v402_v4 = vld [vmem:[#allocation5 + $0x24] ss:$8 sps:$4 sm:$0xff]  }
  0x29   :  { %261 = vmatpush1.bf16.msra.mxu0 %v398_v1  ;;  %v404_v5 = vld [vmem:[#allocation5 + $0x20] ss:$8 sps:$4 sm:$0xff]   ;;  %v405_v6 = vld [vmem:[#allocation5 + $0x34] ss:$8 sps:$4 sm:$0xff]   ;;  %v407_v7 = vld [vmem:[#allocation5 + $0x30] ss:$8 sps:$4 sm:$0xff]  }
  0x2a   :  { %262 = vmatprep.subr.bf16.mxu0 %v399_v2  ;;  %v408_v8 = vld [vmem:[#allocation5 + $0x44] ss:$8 sps:$4 sm:$0xff]   ;;  %v410_v9 = vld [vmem:[#allocation5 + $0x40] ss:$8 sps:$4 sm:$0xff]   ;;  %v411_v10 = vld [vmem:[#allocation5 + $0x54] ss:$8 sps:$4 sm:$0xff]  }
  0x2b   :  { %v413_v11 = vld [vmem:[#allocation5 + $0x50] ss:$8 sps:$4 sm:$0xff]   ;;  %v414_v12 = vld [vmem:[#allocation5 + $0x64] ss:$8 sps:$4 sm:$0xff]   ;;  %v416_v15 = vld [vmem:[#allocation5 + $0x60] ss:$8 sps:$4 sm:$0xff]  }
  0x2c   :  { %v48_v13 = vld [vmem:[#allocation2] sm:$0xff]  ;;  %v420_v18 = vld [vmem:[#allocation5 + $0x84] ss:$8 sps:$4 sm:$0xff]   ;;  %v422_v19 = vld [vmem:[#allocation5 + $0x80] ss:$8 sps:$4 sm:$0xff]   ;;  %v84_v36 = vshrl.u32 %v83_v35, 7 }
  0x2d   :  { %263 = vmatpush1.bf16.msra.mxu0 %v401_v3  ;;  %v356_v14 = vcombine.high %v48_v13, %v48_v13  ;;  %v417_v16 = vld [vmem:[#allocation5 + $0x74] ss:$8 sps:$4 sm:$0xff]   ;;  %v419_v17 = vld [vmem:[#allocation5 + $0x70] ss:$8 sps:$4 sm:$0xff]   ;;  %v426_v22 = vld [vmem:[#allocation5 + $0xa4] ss:$8 sps:$4 sm:$0xff]   ;;  %v355_v34 = vcombine.low %v48_v13, %v48_v13 }
  0x2e   :  { %264 = vmatprep.subr.bf16.mxu0 %v402_v4  ;;  %v423_v20 = vld [vmem:[#allocation5 + $0x94] ss:$8 sps:$4 sm:$0xff]   ;;  %v425_v21 = vld [vmem:[#allocation5 + $0x90] ss:$8 sps:$4 sm:$0xff]   ;;  %v428_v23 = vld [vmem:[#allocation5 + $0xa0] ss:$8 sps:$4 sm:$0xff]  }
  0x2f   :  { %292 = vmatprep.mubr.bf16.mxu0 %v356_v14  ;;  %v429_v24 = vld [vmem:[#allocation5 + $0xb4] ss:$8 sps:$4 sm:$0xff]   ;;  %v431_v25 = vld [vmem:[#allocation5 + $0xb0] ss:$8 sps:$4 sm:$0xff]   ;;  %v432_v26 = vld [vmem:[#allocation5 + $0xc4] ss:$8 sps:$4 sm:$0xff]  }
  0x30   :  { %v434_v27 = vld [vmem:[#allocation5 + $0xc0] ss:$8 sps:$4 sm:$0xff]   ;;  %v435_v28 = vld [vmem:[#allocation5 + $0xd4] ss:$8 sps:$4 sm:$0xff]   ;;  %v437_v29 = vld [vmem:[#allocation5 + $0xd0] ss:$8 sps:$4 sm:$0xff]  }
  0x31   :  { %265 = vmatpush1.bf16.msra.mxu0 %v404_v5  ;;  %v438_v30 = vld [vmem:[#allocation5 + $0xe4] ss:$8 sps:$4 sm:$0xff]   ;;  %v440_v31 = vld [vmem:[#allocation5 + $0xe0] ss:$8 sps:$4 sm:$0xff]   ;;  %v441_v32 = vld [vmem:[#allocation5 + $0xf4] ss:$8 sps:$4 sm:$0xff]  }
  0x32   :  { %266 = vmatprep.subr.bf16.mxu0 %v405_v6  ;;  %v443_v33 = vld [vmem:[#allocation5 + $0xf0] ss:$8 sps:$4 sm:$0xff]   ;;  %v85_v37 = vsub.s32 0, %v84_v36  ;;  %v89_v39 = vsub.s32 1, %v84_v36  ;;  %s570_s23 = smov [#allocation8]   ;;  %s571_s25 = smov [#allocation10]  }
  0x33   :  { %v81_v38 = vld [vmem:[%s690_s2] sm:$0x3]  ;;  %s328_s24 = sshll.u32 %s570_s23, 4  ;;  %s338_s26 = sshll.u32 %s571_s25, 4  ;;  %s329_s24 = int_to_ptr.vmem [resolvable:$true] %s328_s24  ;;  %s642_s26 = int_to_ptr.vmem [resolvable:$true] %s338_s26 }
  0x34   :  { %v86_v40 = vrot.slane %v81_v38, %v85_v37  ;;  %v90_v41 = vrot.slane %v81_v38, %v89_v39  ;;  %s492_s2 = scalar_lea.vmem %s329_s24, 128  ;;  %p497_p3 = scmp.lt.s32.totalorder %s329_s24, %s329_s24 }
  0x35   :  { %267 = vmatpush1.bf16.msra.mxu0 %v407_v7  ;;  %p493_p2 = scmp.ne.s32.totalorder %s329_s24, %s492_s2  ;;  %p498_p4 = scmp.lt.s32.totalorder %s492_s2, %s492_s2 }
  0x36   :  { %268 = vmatprep.subr.bf16.mxu0 %v408_v8 }
  0x37   :  { %p499_p5 = por %p498_p4, %p497_p3 }
  0x39   :  { %269 = vmatpush1.bf16.msra.mxu0 %v410_v9  ;;  %p500_p6 = pnand %p499_p5, %p493_p2 }
  0x3a   :  { %270 = vmatprep.subr.bf16.mxu0 %v411_v10 }
  0x3d   :  { %271 = vmatpush1.bf16.msra.mxu0 %v413_v11 }
  0x3e   :  { %272 = vmatprep.subr.bf16.mxu0 %v414_v12 }
  0x41   :  { %273 = vmatpush1.bf16.msra.mxu0 %v416_v15 }
  0x42   :  { %274 = vmatprep.subr.bf16.mxu0 %v417_v16 }
  0x45   :  { %275 = vmatpush1.bf16.msra.mxu0 %v419_v17 }
  0x46   :  { %276 = vmatprep.subr.bf16.mxu0 %v420_v18 }
  0x49   :  { %277 = vmatpush1.bf16.msra.mxu0 %v422_v19 }
  0x4a   :  { %278 = vmatprep.subr.bf16.mxu0 %v423_v20 }
  0x4d   :  { %279 = vmatpush1.bf16.msra.mxu0 %v425_v21 }
  0x4e   :  { %280 = vmatprep.subr.bf16.mxu0 %v426_v22 }
  0x51   :  { %281 = vmatpush1.bf16.msra.mxu0 %v428_v23 }
  0x52   :  { %282 = vmatprep.subr.bf16.mxu0 %v429_v24 }
  0x55   :  { %283 = vmatpush1.bf16.msra.mxu0 %v431_v25 }
  0x56   :  { %284 = vmatprep.subr.bf16.mxu0 %v432_v26 }
  0x59   :  { %285 = vmatpush1.bf16.msra.mxu0 %v434_v27 }
  0x5a   :  { %286 = vmatprep.subr.bf16.mxu0 %v435_v28 }
  0x5d   :  { %287 = vmatpush1.bf16.msra.mxu0 %v437_v29 }
  0x5e   :  { %288 = vmatprep.subr.bf16.mxu0 %v438_v30 }
  0x61   :  { %289 = vmatpush1.bf16.msra.mxu0 %v440_v31 }
  0x62   :  { %290 = vmatprep.subr.bf16.mxu0 %v441_v32 }
  0x65   :  { %291 = vmatpush1.bf16.msra.mxu0 %v443_v33 }
  0x68   :  { %293 = vmatmul.mubr.bf16.vlgmr.msra.gmra.mrb[0].mxu0 %v355_v34 }
 0x13b   :  { %v294_v42 = vpop.f32.mrb[0].mxu0 }
 0x13c   :  { %v295_v43 = vadd.f32 %v294_v42, %v86_v40  ;;  %v296_v44 = vpop.f32.mrb[1].mxu0 }
 0x13d   :  { %v297_v45 = vadd.f32 %v296_v44, %v90_v41  ;;  %v298_v46 = vpop.f32.mrb[2].mxu0 }
 0x13e   :  { %v301_v47 = vmax.f32 %v295_v43, 0.0  ;;  %v299_v48 = vpop.f32.mrb[3].mxu0 }
 0x13f   :  { %v302_v49 = vmax.f32 %v297_v45, 0.0 }
 0x140   :  { %310 = vst [vmem:[#allocation8] sm:$0xff] %v301_v47 }
 0x141   :  { %v303_v50 = vmul.f32 0.5, %v302_v49  ;;  %311 = vst [vmem:[#allocation10] sm:$0xff] %v302_v49 }
 0x142   :  { %503 = shalt.err (!%p500_p6)
}
 0x143   :  { %s504_s29 = scalar_lea.hbm %s693_s5, 128 }
 0x144   :  { %p505_p7 = scmp.ne.s32.totalorder %s693_s5, %s504_s29  ;;  %p508_p8 = scmp.lt.u32.totalorder %s504_s29, %s693_s5 }
 0x146   :  { %p510_p9 = pnand %p508_p8, %p505_p7 }
 0x148   :  { %513 = shalt.err (!%p510_p9)
}
 0x149   :  { %331 = dma.vmem_to_hbm [thread:$0]  %s329_s24, 128, %s693_s5, [#allocation9]  }
 0x14a   :  { %s514_s12 = scalar_lea.vmem %s642_s26, 128  ;;  %p519_p11 = scmp.lt.s32.totalorder %s642_s26, %s642_s26 }
 0x14b   :  { %p515_p10 = scmp.ne.s32.totalorder %s642_s26, %s514_s12  ;;  %p520_p12 = scmp.lt.s32.totalorder %s514_s12, %s514_s12 }
 0x14d   :  { %p521_p13 = por %p520_p12, %p519_p11 }
 0x14f   :  { %p522_p0 = pnand %p521_p13, %p515_p10 }
 0x151   :  { %525 = shalt.err (!%p522_p0)
}
 0x152   :  { %s526_s15 = scalar_lea.hbm %s694_s6, 128 }
 0x153   :  { %p527_p1 = scmp.ne.s32.totalorder %s694_s6, %s526_s15  ;;  %p530_p2 = scmp.lt.u32.totalorder %s526_s15, %s694_s6 }
 0x155   :  { %p532_p3 = pnand %p530_p2, %p527_p1 }
 0x157   :  { %535 = shalt.err (!%p532_p3)
}
 0x158   :  { %341 = dma.vmem_to_hbm [thread:$0]  %s642_s26, 128, %s694_s6, [#allocation9]   ;;  %v304_v51 = vmul.f32 1.442695, %v303_v50  ;;  %v306_v52 = vld [vmem:[%s691_s3] sm:$0xff] }
 0x159   :  { %s572_s1 = smov [#allocation7]  }
 0x15a   :  { %446 = vpow2.f32 %v304_v51  ;;  %s318_s22 = sshll.u32 %s572_s1, 4  ;;  %s319_s22 = int_to_ptr.vmem [resolvable:$true] %s318_s22 }
 0x15b   :  { %s536_s23 = scalar_lea.vmem %s319_s22, 128  ;;  %p541_p5 = scmp.lt.s32.totalorder %s319_s22, %s319_s22 }
 0x15c   :  { %p537_p4 = scmp.ne.s32.totalorder %s319_s22, %s536_s23  ;;  %p542_p6 = scmp.lt.s32.totalorder %s536_s23, %s536_s23 }
 0x15e   :  { %p543_p7 = por %p542_p6, %p541_p5 }
 0x160   :  { %p544_p8 = pnand %p543_p7, %p537_p4 }
 0x164   :  { %v447_v53 = vpop.eup %446 }
 0x165   :  { %v307_v54 = vmul.f32 %v447_v53, %v306_v52 }
 0x167   :  { %v308_v55 = vadd.f32 %v307_v54, %v301_v47 }
 0x169   :  { %309 = vst [vmem:[#allocation7] sm:$0xff] %v308_v55 }
 0x16a   :  { %547 = shalt.err (!%p544_p8)
}
 0x16b   :  { %s548_s25 = scalar_lea.hbm %s692_s4, 128 }
 0x16c   :  { %p549_p9 = scmp.ne.s32.totalorder %s692_s4, %s548_s25  ;;  %p552_p10 = scmp.lt.u32.totalorder %s548_s25, %s692_s4 }
 0x16e   :  { %p554_p11 = pnand %p552_p10, %p549_p9 }
 0x170   :  { %557 = shalt.err (!%p554_p11)
}
 0x171   :  { %321 = dma.vmem_to_hbm [thread:$0]  %s319_s22, 128, %s692_s4, [#allocation4]  }
 0x172   :  { %562 = dma.done.wait [#allocation4], 128  }
 0x173   :  { %563 = vsyncadd [#allocation4], 4294967168 }
 0x174   :  { %564 = dma.done.wait [#allocation9], 256  }
 0x175   :  { %565 = vsyncadd [#allocation9], 4294967040 }
 0x176   :  { %351 = vsyncpa [#allocation3], 1 }
 0x177   :  { %352 = vsyncpa [#allocation6], 1 }
 0x178   :  { %353 = vsyncpa [#allocation4], 1 }
 0x179   :  { %354 = vsyncpa [#allocation9], 1 }

</bundles_post_ra>
